<compile_context>
chip_gen: v7x
topology: tpu7x:2x2x1
jax: 0.10.0
libtpu: 0.0.40
codegen_flags: <defaults>
</compile_context>

<pallas_src>
import functools

import jax
import jax.numpy as jnp
from jax.experimental import pallas as pl
from jax.experimental.pallas import tpu as pltpu

H1, H2 = 400, 300   # logical hidden sizes from the PyTorch module
LANE = 128
SUBLANE = 8


def _round_up(x, m):
    return (x + m - 1) // m * m


def actor_kernel(ma_ref, s_ref, w1_ref, b1_ref, w2_ref, b2_ref, w3_ref, b3_ref, o_ref):
    """Fused 3-layer MLP on one (TB, S_pad) batch tile.

    State and weights arrive in bf16 (MXU fast path); accumulation, bias add,
    ReLU and tanh stay in f32.  All padded lanes are zero, relu(0) = 0, so
    padded hidden units contribute nothing downstream.
    """
    x = s_ref[...]                                                         # (TB, S_pad) bf16
    h1 = jnp.dot(x, w1_ref[...], preferred_element_type=jnp.float32) + b1_ref[...]
    h1 = jnp.maximum(h1, 0.0)                                              # (TB, 512) f32
    h2 = jnp.dot(h1.astype(jnp.bfloat16), w2_ref[...],
                 preferred_element_type=jnp.float32) + b2_ref[...]
    h2 = jnp.maximum(h2, 0.0)                                              # (TB, 384) f32
    h3 = jnp.dot(h2.astype(jnp.bfloat16), w3_ref[...],
                 preferred_element_type=jnp.float32) + b3_ref[...]
    o_ref[...] = (ma_ref[0, 0] * jnp.tanh(h3)).astype(o_ref.dtype)         # (TB, A_pad)


def init_actor_params(key, state_dim, action_dim):
    """PyTorch nn.Linear-style init (uniform +-1/sqrt(fan_in)).
    Weights stored as (in_features, out_features); biases as (1, out)."""
    def linear(k, fan_in, fan_out):
        kw, kb = jax.random.split(k)
        bound = 1.0 / jnp.sqrt(jnp.float32(fan_in))
        w = jax.random.uniform(kw, (fan_in, fan_out), jnp.float32, -bound, bound)
        b = jax.random.uniform(kb, (1, fan_out), jnp.float32, -bound, bound)
        return w, b

    k1, k2, k3 = jax.random.split(key, 3)
    w1, b1 = linear(k1, state_dim, H1)
    w2, b2 = linear(k2, H1, H2)
    w3, b3 = linear(k3, H2, action_dim)
    return {"w1": w1, "b1": b1, "w2": w2, "b2": b2, "w3": w3, "b3": b3}


def prepare_padded_params(params, state_dim, action_dim):
    """One-time: zero-pad to lane-aligned shapes and cast weights to bf16.
    400 -> 512, 300 -> 384 (128-aligned; 384 is native MXU granularity on v5e
    and costs no extra 256-wide passes on v6e/v7x)."""
    s_pad = _round_up(state_dim, LANE)
    h1_pad = _round_up(H1, LANE)    # 512
    h2_pad = _round_up(H2, LANE)    # 384
    a_pad = _round_up(action_dim, LANE)

    def pad_to(a, shape):
        out = jnp.zeros(shape, a.dtype)
        return out.at[tuple(slice(0, d) for d in a.shape)].set(a)

    return {
        "w1": pad_to(params["w1"], (s_pad, h1_pad)).astype(jnp.bfloat16),
        "b1": pad_to(params["b1"], (1, h1_pad)).astype(jnp.float32),
        "w2": pad_to(params["w2"], (h1_pad, h2_pad)).astype(jnp.bfloat16),
        "b2": pad_to(params["b2"], (1, h2_pad)).astype(jnp.float32),
        "w3": pad_to(params["w3"], (h2_pad, a_pad)).astype(jnp.bfloat16),
        "b3": pad_to(params["b3"], (1, a_pad)).astype(jnp.float32),
    }


@functools.partial(jax.jit, static_argnames=("action_dim", "batch_tile"))
def actor_forward(state, padded_params, max_action, action_dim, batch_tile=1024):
    """state: (batch, state_dim) f32. padded_params: output of prepare_padded_params."""
    p = padded_params
    B, S = state.shape
    s_pad, h1_pad = p["w1"].shape
    h2_pad = p["w2"].shape[1]
    a_pad = p["w3"].shape[1]

    # Batch tile: multiple of SUBLANE, at most `batch_tile` rows, and capped at
    # ~ceil(B/2) so the grid has >= 2 steps whenever possible (keeps both v7x
    # TensorCores busy under dimension_semantics=("parallel",)).
    half_b = _round_up((B + 1) // 2, SUBLANE)
    tb = _round_up(min(batch_tile, half_b), SUBLANE)
    b_pad = _round_up(B, tb)
    grid = (b_pad // tb,)

    # Feed the kernel bf16 state (halves state DMA bytes).  Fuse the cast into
    # the pad so at most one extra HBM pass is paid; skip the pad copy entirely
    # when shapes already line up.
    if (B % tb == 0) and (S == s_pad):
        state_p = state.astype(jnp.bfloat16)
    else:
        state_p = (jnp.zeros((b_pad, s_pad), jnp.bfloat16)
                   .at[:B, :S].set(state.astype(jnp.bfloat16)))

    ma = jnp.full((1, 1), max_action, jnp.float32)   # runtime scalar -> SMEM, no recompile

    out_padded = pl.pallas_call(
        actor_kernel,
        out_shape=jax.ShapeDtypeStruct((b_pad, a_pad), jnp.float32),
        grid=grid,
        in_specs=[
            pl.BlockSpec(memory_space=pltpu.MemorySpace.SMEM),     # max_action scalar
            pl.BlockSpec((tb, s_pad), lambda i: (i, 0)),           # state tile (pipelined)
            pl.BlockSpec((s_pad, h1_pad), lambda i: (0, 0)),       # W1 \
            pl.BlockSpec((1, h1_pad), lambda i: (0, 0)),           # b1  \ constant index_map:
            pl.BlockSpec((h1_pad, h2_pad), lambda i: (0, 0)),      # W2   > DMA'd once, stay
            pl.BlockSpec((1, h2_pad), lambda i: (0, 0)),           # b2  / VMEM-resident
            pl.BlockSpec((h2_pad, a_pad), lambda i: (0, 0)),       # W3 /
            pl.BlockSpec((1, a_pad), lambda i: (0, 0)),            # b3
        ],
        out_specs=pl.BlockSpec((tb, a_pad), lambda i: (i, 0)),     # lane-dense output slab
        compiler_params=pltpu.CompilerParams(
            dimension_semantics=("parallel",),                     # shard batch across TCs
        ),
    )(ma, state_p, p["w1"], p["b1"], p["w2"], p["b2"], p["w3"], p["b3"])

    return out_padded[:B, :action_dim]


def _ref_bf16(state, params, max_action):
    """Same bf16-weight / f32-accumulate math in pure JAX (tight check)."""
    h1 = jnp.maximum(
        jnp.dot(state.astype(jnp.bfloat16), params["w1"].astype(jnp.bfloat16),
                preferred_element_type=jnp.float32) + params["b1"], 0.0)
    h2 = jnp.maximum(
        jnp.dot(h1.astype(jnp.bfloat16), params["w2"].astype(jnp.bfloat16),
                preferred_element_type=jnp.float32) + params["b2"], 0.0)
    h3 = jnp.dot(h2.astype(jnp.bfloat16), params["w3"].astype(jnp.bfloat16),
                 preferred_element_type=jnp.float32) + params["b3"]
    return max_action * jnp.tanh(h3)


def _ref_f32(state, params, max_action):
    """Full-precision f32 semantics of the original PyTorch module (loose check)."""
    h1 = jnp.maximum(state @ params["w1"] + params["b1"], 0.0)
    h2 = jnp.maximum(h1 @ params["w2"] + params["b2"], 0.0)
    return max_action * jnp.tanh(h2 @ params["w3"] + params["b3"])


if __name__ == "__main__":
    key = jax.random.PRNGKey(0)

    # --- Config 1: tiny shapes, padded-state path, grid=(1,) ------------------
    k_params, k_state, k2_params, k2_state = jax.random.split(key, 4)
    batch, state_dim, action_dim = 2, 16, 4
    max_action = 2.0

    params = init_actor_params(k_params, state_dim, action_dim)
    padded = prepare_padded_params(params, state_dim, action_dim)
    state = jax.random.normal(k_state, (batch, state_dim), jnp.float32)

    out = jax.block_until_ready(actor_forward(state, padded, max_action, action_dim))
    assert out.shape == (batch, action_dim)

    ref_b = _ref_bf16(state, params, max_action)
    assert jnp.allclose(out, ref_b, atol=2e-3, rtol=2e-3), \
        f"mismatch vs bf16 reference: {jnp.max(jnp.abs(out - ref_b))}"
    ref_f = _ref_f32(state, params, max_action)
    assert jnp.allclose(out, ref_f, atol=1e-1, rtol=1e-1), \
        f"mismatch vs f32 reference: {jnp.max(jnp.abs(out - ref_f))}"

    # --- Config 2: lane-aligned state_dim, no-pad fast path, grid=(2,) --------
    batch2, state_dim2, action_dim2 = 16, 128, 4
    params2 = init_actor_params(k2_params, state_dim2, action_dim2)
    padded2 = prepare_padded_params(params2, state_dim2, action_dim2)
    state2 = jax.random.normal(k2_state, (batch2, state_dim2), jnp.float32)

    out2 = jax.block_until_ready(actor_forward(state2, padded2, max_action, action_dim2))
    assert out2.shape == (batch2, action_dim2)

    ref2_b = _ref_bf16(state2, params2, max_action)
    assert jnp.allclose(out2, ref2_b, atol=2e-3, rtol=2e-3), \
        f"mismatch vs bf16 reference (cfg2): {jnp.max(jnp.abs(out2 - ref2_b))}"
    ref2_f = _ref_f32(state2, params2, max_action)
    assert jnp.allclose(out2, ref2_f, atol=1e-1, rtol=1e-1), \
        f"mismatch vs f32 reference (cfg2): {jnp.max(jnp.abs(out2 - ref2_f))}"

    print("KERNEL_OK")
</pallas_src>

<mosaic_0001>
module attributes {stable_mosaic.version = 11 : i64} {
  func.func @actor_kernel(%arg0: i32, %arg1: memref<1x1xf32, #tpu.memory_space<smem>>, %arg2: memref<8x128xbf16, #tpu.memory_space<vmem>>, %arg3: memref<128x512xbf16, #tpu.memory_space<vmem>>, %arg4: memref<1x512xf32, #tpu.memory_space<vmem>>, %arg5: memref<512x384xbf16, #tpu.memory_space<vmem>>, %arg6: memref<1x384xf32, #tpu.memory_space<vmem>>, %arg7: memref<384x128xbf16, #tpu.memory_space<vmem>>, %arg8: memref<1x128xf32, #tpu.memory_space<vmem>>, %arg9: memref<8x128xf32, #tpu.memory_space<vmem>>) attributes {dimension_semantics = [#tpu.dimension_semantics<parallel>], iteration_bounds = array<i64: 1>, scalar_prefetch = 0 : i64, scratch_operands = 0 : i64, tpu.core_type = #tpu.core_type<tc>, window_params = [{transform_indices = @transform_0, window_bounds = array<i64: 1, 1>}, {transform_indices = @transform_1, window_bounds = array<i64: 8, 128>}, {pipeline_mode = #tpu.pipeline_mode<synchronous>, transform_indices = @transform_2, window_bounds = array<i64: 128, 512>}, {pipeline_mode = #tpu.pipeline_mode<synchronous>, transform_indices = @transform_3, window_bounds = array<i64: 1, 512>}, {pipeline_mode = #tpu.pipeline_mode<synchronous>, transform_indices = @transform_4, window_bounds = array<i64: 512, 384>}, {pipeline_mode = #tpu.pipeline_mode<synchronous>, transform_indices = @transform_5, window_bounds = array<i64: 1, 384>}, {pipeline_mode = #tpu.pipeline_mode<synchronous>, transform_indices = @transform_6, window_bounds = array<i64: 384, 128>}, {pipeline_mode = #tpu.pipeline_mode<synchronous>, transform_indices = @transform_7, window_bounds = array<i64: 1, 128>}, {transform_indices = @transform_8, window_bounds = array<i64: 8, 128>}]} {
    %c0 = arith.constant 0 : index
    %c0_0 = arith.constant 0 : index
    %0 = vector.load %arg2[%c0, %c0_0] : memref<8x128xbf16, #tpu.memory_space<vmem>>, vector<8x128xbf16>
    %c0_1 = arith.constant 0 : index
    %c0_2 = arith.constant 0 : index
    %1 = vector.load %arg3[%c0_1, %c0_2] : memref<128x512xbf16, #tpu.memory_space<vmem>>, vector<128x512xbf16>
    %cst = arith.constant dense<0.000000e+00> : vector<8x512xf32>
    %2 = tpu.matmul %0, %1, %cst {dimension_numbers = #tpu.dot_dimension_numbers<[1], [0], [0], [1], [0, 0, 1, 1], [], []>} : vector<8x128xbf16>, vector<128x512xbf16>, vector<8x512xf32> -> vector<8x512xf32>
    %c0_3 = arith.constant 0 : index
    %c0_4 = arith.constant 0 : index
    %3 = vector.load %arg4[%c0_3, %c0_4] : memref<1x512xf32, #tpu.memory_space<vmem>>, vector<1x512xf32>
    %4 = vector.broadcast %3 : vector<1x512xf32> to vector<8x512xf32>
    %5 = arith.addf %2, %4 : vector<8x512xf32>
    %cst_5 = arith.constant 0.000000e+00 : f32
    %6 = vector.broadcast %cst_5 : f32 to vector<8x512xf32>
    %7 = arith.maximumf %5, %6 : vector<8x512xf32>
    %8 = arith.truncf %7 : vector<8x512xf32> to vector<8x512xbf16>
    %c0_6 = arith.constant 0 : index
    %c0_7 = arith.constant 0 : index
    %9 = vector.load %arg5[%c0_6, %c0_7] : memref<512x384xbf16, #tpu.memory_space<vmem>>, vector<512x384xbf16>
    %cst_8 = arith.constant dense<0.000000e+00> : vector<8x384xf32>
    %10 = tpu.matmul %8, %9, %cst_8 {dimension_numbers = #tpu.dot_dimension_numbers<[1], [0], [0], [1], [0, 0, 1, 1], [], []>} : vector<8x512xbf16>, vector<512x384xbf16>, vector<8x384xf32> -> vector<8x384xf32>
    %c0_9 = arith.constant 0 : index
    %c0_10 = arith.constant 0 : index
    %11 = vector.load %arg6[%c0_9, %c0_10] : memref<1x384xf32, #tpu.memory_space<vmem>>, vector<1x384xf32>
    %12 = vector.broadcast %11 : vector<1x384xf32> to vector<8x384xf32>
    %13 = arith.addf %10, %12 : vector<8x384xf32>
    %cst_11 = arith.constant 0.000000e+00 : f32
    %14 = vector.broadcast %cst_11 : f32 to vector<8x384xf32>
    %15 = arith.maximumf %13, %14 : vector<8x384xf32>
    %16 = arith.truncf %15 : vector<8x384xf32> to vector<8x384xbf16>
    %c0_12 = arith.constant 0 : index
    %c0_13 = arith.constant 0 : index
    %17 = vector.load %arg7[%c0_12, %c0_13] : memref<384x128xbf16, #tpu.memory_space<vmem>>, vector<384x128xbf16>
    %cst_14 = arith.constant dense<0.000000e+00> : vector<8x128xf32>
    %18 = tpu.matmul %16, %17, %cst_14 {dimension_numbers = #tpu.dot_dimension_numbers<[1], [0], [0], [1], [0, 0, 1, 1], [], []>} : vector<8x384xbf16>, vector<384x128xbf16>, vector<8x128xf32> -> vector<8x128xf32>
    %c0_15 = arith.constant 0 : index
    %c0_16 = arith.constant 0 : index
    %19 = vector.load %arg8[%c0_15, %c0_16] : memref<1x128xf32, #tpu.memory_space<vmem>>, vector<1x128xf32>
    %20 = vector.broadcast %19 : vector<1x128xf32> to vector<8x128xf32>
    %21 = arith.addf %18, %20 : vector<8x128xf32>
    %c0_17 = arith.constant 0 : index
    %c0_18 = arith.constant 0 : index
    %22 = memref.load %arg1[%c0_17, %c0_18] : memref<1x1xf32, #tpu.memory_space<smem>>
    %23 = math.tanh %21 : vector<8x128xf32>
    %24 = vector.broadcast %22 : f32 to vector<8x128xf32>
    %25 = arith.mulf %24, %23 : vector<8x128xf32>
    %c0_19 = arith.constant 0 : index
    %c0_20 = arith.constant 0 : index
    %26 = vector.load %arg9[%c0_19, %c0_20] : memref<8x128xf32, #tpu.memory_space<vmem>>, vector<8x128xf32>
    tpu.vector_store %arg9[%c0_19, %c0_20], %25 {strides = array<i32>} : memref<8x128xf32, #tpu.memory_space<vmem>>, vector<8x128xf32>,
    return
  }
  func.func @transform_0(%arg0: i32) -> (i32, i32) {
    %c0_i32 = arith.constant 0 : i32
    %c0_i32_0 = arith.constant 0 : i32
    %c0_i32_1 = arith.constant 0 : i32
    return %c0_i32, %c0_i32_0 : i32, i32
  }
  func.func @transform_1(%arg0: i32) -> (i32, i32) {
    %c0_i32 = arith.constant 0 : i32
    %c0_i32_0 = arith.constant 0 : i32
    return %arg0, %c0_i32 : i32, i32
  }
  func.func @transform_2(%arg0: i32) -> (i32, i32) {
    %c0_i32 = arith.constant 0 : i32
    %c0_i32_0 = arith.constant 0 : i32
    %c0_i32_1 = arith.constant 0 : i32
    return %c0_i32, %c0_i32_0 : i32, i32
  }
  func.func @transform_3(%arg0: i32) -> (i32, i32) {
    %c0_i32 = arith.constant 0 : i32
    %c0_i32_0 = arith.constant 0 : i32
    %c0_i32_1 = arith.constant 0 : i32
    return %c0_i32, %c0_i32_0 : i32, i32
  }
  func.func @transform_4(%arg0: i32) -> (i32, i32) {
    %c0_i32 = arith.constant 0 : i32
    %c0_i32_0 = arith.constant 0 : i32
    %c0_i32_1 = arith.constant 0 : i32
    return %c0_i32, %c0_i32_0 : i32, i32
  }
  func.func @transform_5(%arg0: i32) -> (i32, i32) {
    %c0_i32 = arith.constant 0 : i32
    %c0_i32_0 = arith.constant 0 : i32
    %c0_i32_1 = arith.constant 0 : i32
    return %c0_i32, %c0_i32_0 : i32, i32
  }
  func.func @transform_6(%arg0: i32) -> (i32, i32) {
    %c0_i32 = arith.constant 0 : i32
    %c0_i32_0 = arith.constant 0 : i32
    %c0_i32_1 = arith.constant 0 : i32
    return %c0_i32, %c0_i32_0 : i32, i32
  }
  func.func @transform_7(%arg0: i32) -> (i32, i32) {
    %c0_i32 = arith.constant 0 : i32
    %c0_i32_0 = arith.constant 0 : i32
    %c0_i32_1 = arith.constant 0 : i32
    return %c0_i32, %c0_i32_0 : i32, i32
  }
  func.func @transform_8(%arg0: i32) -> (i32, i32) {
    %c0_i32 = arith.constant 0 : i32
    %c0_i32_0 = arith.constant 0 : i32
    return %arg0, %c0_i32 : i32, i32
  }
}

</mosaic_0001>

<bundles_post_ra>
// kernel: actor_forward.1
= control target key start
LH: loop header
LB: loop body
LE: loop exit
PB: predicated region body
PF: predicated region fallthrough
CT: control target
= control target key end

     0   :  { %14 = vsyncpa [#allocation4], 0  ;;  %s2165_s0 = inlined_call_operand.<no memory space> [shape: f32[1,1], index: 0, kind: input, shape index: {}]   ;;  %s2166_s1 = inlined_call_operand.vmem [shape: bf16[8,128], index: 1, kind: input, shape index: {}]   ;;  %s2167_s2 = inlined_call_operand.hbm [shape: bf16[128,512], index: 2, kind: input, shape index: {}]   ;;  %s2168_s3 = inlined_call_operand.vmem [shape: f32[1,512], index: 3, kind: input, shape index: {}]   ;;  %s2169_s4 = inlined_call_operand.hbm [shape: bf16[512,384], index: 4, kind: input, shape index: {}]   ;;  %s2170_s5 = inlined_call_operand.vmem [shape: f32[1,384], index: 5, kind: input, shape index: {}]   ;;  %s2171_s6 = inlined_call_operand.hbm [shape: bf16[384,128], index: 6, kind: input, shape index: {}]   ;;  %s2172_s7 = inlined_call_operand.vmem [shape: f32[1,128], index: 7, kind: input, shape index: {}]   ;;  %s2173_s8 = inlined_call_operand.vmem [shape: f32[8,128], index: 8, kind: output, shape index: {}]  }
   0x1   :  { %15 = vsyncpa [#allocation6], 0  ;;  %s2030_s27 = smov [#allocation5]   ;;  %s1960_s9 = scalar_lea.hbm %s2169_s4, 12288 }
   0x2   :  { %s39_s28 = sshll.u32 %s2030_s27, 4  ;;  %p1961_p0 = scmp.ne.s32.totalorder %s2169_s4, %s1960_s9  ;;  %s40_s28 = int_to_ptr.vmem [resolvable:$true] %s39_s28 }
   0x3   :  { %p1964_p1 = scmp.lt.u32.totalorder %s1960_s9, %s2169_s4 }
   0x5   :  { %p1966_p2 = pnand %p1964_p1, %p1961_p0 }
   0x7   :  { %1969 = shalt.err (!%p1966_p2)
}
   0x8   :  { %s1970_s14 = scalar_lea.vmem %s40_s28, 12288  ;;  %p1975_p4 = scmp.lt.s32.totalorder %s40_s28, %s40_s28 }
   0x9   :  { %p1971_p3 = scmp.ne.s32.totalorder %s40_s28, %s1970_s14  ;;  %p1976_p5 = scmp.lt.s32.totalorder %s1970_s14, %s1970_s14 }
   0xb   :  { %p1977_p6 = por %p1976_p5, %p1975_p4 }
   0xd   :  { %p1978_p7 = pnand %p1977_p6, %p1971_p3 }
   0xf   :  { %1981 = shalt.err (!%p1978_p7)
}
  0x10   :  { %s2031_s15 = smov 192   ;;  %s2032_s16 = smov 12  }
  0x11   :  { %45 = dma.hbm_to_vmem [thread:$0]  %s2169_s4, 12288, %s40_s28, [#allocation6], %s2031_s15, %s2031_s15, %s2032_s16  }
  0x12   :  { %s2033_s19 = smov [#allocation3]   ;;  %s1982_s23 = scalar_lea.hbm %s2167_s2, 4096 }
  0x13   :  { %s25_s20 = sshll.u32 %s2033_s19, 4  ;;  %p1983_p8 = scmp.ne.s32.totalorder %s2167_s2, %s1982_s23  ;;  %s26_s20 = int_to_ptr.vmem [resolvable:$true] %s25_s20 }
  0x14   :  { %p1986_p9 = scmp.lt.u32.totalorder %s1982_s23, %s2167_s2 }
  0x16   :  { %p1988_p10 = pnand %p1986_p9, %p1983_p8 }
  0x18   :  { %1991 = shalt.err (!%p1988_p10)
}
  0x19   :  { %s1992_s29 = scalar_lea.vmem %s26_s20, 4096  ;;  %p1997_p12 = scmp.lt.s32.totalorder %s26_s20, %s26_s20 }
  0x1a   :  { %p1993_p11 = scmp.ne.s32.totalorder %s26_s20, %s1992_s29  ;;  %p1998_p13 = scmp.lt.s32.totalorder %s1992_s29, %s1992_s29 }
  0x1c   :  { %p1999_p0 = por %p1998_p13, %p1997_p12 }
  0x1e   :  { %p2000_p1 = pnand %p1999_p0, %p1993_p11 }
  0x20   :  { %2003 = shalt.err (!%p2000_p1)
}
  0x21   :  { %s2034_s4 = smov 256   ;;  %s2035_s28 = smov 16  }
  0x22   :  { %31 = dma.hbm_to_vmem [thread:$0]  %s2167_s2, 4096, %s26_s20, [#allocation4], %s2034_s4, %s2034_s4, %s2035_s28  }
  0x23   :  { %s2036_s10 = smov [#allocation7]   ;;  %s2004_s14 = scalar_lea.hbm %s2171_s6, 3072 }
  0x24   :  { %s53_s11 = sshll.u32 %s2036_s10, 4  ;;  %p2005_p2 = scmp.ne.s32.totalorder %s2171_s6, %s2004_s14  ;;  %s54_s11 = int_to_ptr.vmem [resolvable:$true] %s53_s11 }
  0x25   :  { %p2008_p3 = scmp.lt.u32.totalorder %s2004_s14, %s2171_s6 }
  0x27   :  { %p2010_p4 = pnand %p2008_p3, %p2005_p2 }
  0x29   :  { %2013 = shalt.err (!%p2010_p4)
}
  0x2a   :  { %s2014_s19 = scalar_lea.vmem %s54_s11, 3072  ;;  %p2019_p6 = scmp.lt.s32.totalorder %s54_s11, %s54_s11 }
  0x2b   :  { %p2015_p5 = scmp.ne.s32.totalorder %s54_s11, %s2014_s19  ;;  %p2020_p7 = scmp.lt.s32.totalorder %s2014_s19, %s2014_s19 }
  0x2d   :  { %p2021_p8 = por %p2020_p7, %p2019_p6 }
  0x2f   :  { %p2022_p9 = pnand %p2021_p8, %p2015_p5 }
  0x31   :  { %2025 = shalt.err (!%p2022_p9)
}
  0x32   :  { %s2037_s2 = smov 64   ;;  %s2038_s20 = smov 4  }
  0x33   :  { %59 = dma.hbm_to_vmem [thread:$0]  %s2171_s6, 3072, %s54_s11, [#allocation6], %s2037_s2, %s2037_s2, %s2038_s20  }
  0x34   :  { %2026 = dma.done.wait [#allocation4], 4096  }
  0x35   :  { %2027 = vsyncadd [#allocation4], 4294963200 }
  0x36   :  { %2028 = dma.done.wait [#allocation6], 15360  }
  0x37   :  { %2029 = vsyncadd [#allocation6], 4294951936  ;;  %v2039_v0 = vmov 0   ;;  %v1758_v1 = vld [vmem:[#allocation3 + $0x4] ss:$16 sps:$4 sm:$0xff]   ;;  %vm2041_vm0 = vmmov 0  }
  0x38   :  { %319 = vmatprep.mubr.bf16.mxu0 %v2039_v0  ;;  %360 = vmatprep.mubr.bf16.mxu1 %v2039_v0  ;;  %v1760_v2 = vld [vmem:[#allocation3] ss:$16 sps:$4 sm:$0xff]   ;;  %v1761_v3 = vld [vmem:[#allocation3 + $0x24] ss:$16 sps:$4 sm:$0xff]   ;;  %v1782_v10 = vld [vmem:[#allocation3 + $0xc] ss:$16 sps:$4 sm:$0xff]  }
  0x39   :  { %287 = vmatprep.subr.bf16.mxu0 %v1758_v1  ;;  %v1763_v4 = vld [vmem:[#allocation3 + $0x20] ss:$16 sps:$4 sm:$0xff]   ;;  %v1764_v5 = vld [vmem:[#allocation3 + $0x44] ss:$16 sps:$4 sm:$0xff]   ;;  %v1784_v11 = vld [vmem:[#allocation3 + $0x8] ss:$16 sps:$4 sm:$0xff]   ;;  %328 = vmatprep.subr.bf16.mxu1 %v1782_v10 }
  0x3a   :  { %288 = vmatpush1.bf16.msra.mxu0 %v1760_v2  ;;  %v1766_v6 = vld [vmem:[#allocation3 + $0x40] ss:$16 sps:$4 sm:$0xff]   ;;  %v1767_v7 = vld [vmem:[#allocation3 + $0x64] ss:$16 sps:$4 sm:$0xff]   ;;  %v1785_v12 = vld [vmem:[#allocation3 + $0x2c] ss:$16 sps:$4 sm:$0xff]   ;;  %329 = vmatpush1.bf16.msra.mxu1 %v1784_v11 }
  0x3b   :  { %289 = vmatprep.subr.bf16.mxu0 %v1761_v3  ;;  %v1769_v8 = vld [vmem:[#allocation3 + $0x60] ss:$16 sps:$4 sm:$0xff]   ;;  %v1770_v9 = vld [vmem:[#allocation3 + $0x84] ss:$16 sps:$4 sm:$0xff]   ;;  %v1787_v14 = vld [vmem:[#allocation3 + $0x28] ss:$16 sps:$4 sm:$0xff]   ;;  %330 = vmatprep.subr.bf16.mxu1 %v1785_v12 }
  0x3c   :  { %v1772_v13 = vld [vmem:[#allocation3 + $0x80] ss:$16 sps:$4 sm:$0xff]   ;;  %v1788_v15 = vld [vmem:[#allocation3 + $0x4c] ss:$16 sps:$4 sm:$0xff]   ;;  %v1773_v16 = vld [vmem:[#allocation3 + $0xa4] ss:$16 sps:$4 sm:$0xff]  }
  0x3d   :  { %v1775_v17 = vld [vmem:[#allocation3 + $0xa0] ss:$16 sps:$4 sm:$0xff]   ;;  %v1790_v18 = vld [vmem:[#allocation3 + $0x48] ss:$16 sps:$4 sm:$0xff]   ;;  %v1791_v19 = vld [vmem:[#allocation3 + $0x6c] ss:$16 sps:$4 sm:$0xff]  }
  0x3e   :  { %290 = vmatpush1.bf16.msra.mxu0 %v1763_v4  ;;  %331 = vmatpush1.bf16.msra.mxu1 %v1787_v14  ;;  %v1776_v20 = vld [vmem:[#allocation3 + $0xc4] ss:$16 sps:$4 sm:$0xff]   ;;  %v1778_v21 = vld [vmem:[#allocation3 + $0xc0] ss:$16 sps:$4 sm:$0xff]   ;;  %v1793_v22 = vld [vmem:[#allocation3 + $0x68] ss:$16 sps:$4 sm:$0xff]  }
  0x3f   :  { %291 = vmatprep.subr.bf16.mxu0 %v1764_v5  ;;  %332 = vmatprep.subr.bf16.mxu1 %v1788_v15  ;;  %v1794_v23 = vld [vmem:[#allocation3 + $0x8c] ss:$16 sps:$4 sm:$0xff]   ;;  %v1779_v24 = vld [vmem:[#allocation3 + $0xe4] ss:$16 sps:$4 sm:$0xff]   ;;  %v1781_v25 = vld [vmem:[#allocation3 + $0xe0] ss:$16 sps:$4 sm:$0xff]  }
  0x40   :  { %v1796_v26 = vld [vmem:[#allocation3 + $0x88] ss:$16 sps:$4 sm:$0xff]   ;;  %v1797_v27 = vld [vmem:[#allocation3 + $0xac] ss:$16 sps:$4 sm:$0xff]   ;;  %v1808_v28 = vld [vmem:[#allocation5 + $0x4] ss:$12 sps:$4 sm:$0xff]  }
  0x41   :  { %v72_v29 = vld [vmem:[%s2166_s1] sm:$0xf]  ;;  %v1799_v30 = vld [vmem:[#allocation3 + $0xa8] ss:$16 sps:$4 sm:$0xff]   ;;  %v1800_v31 = vld [vmem:[#allocation3 + $0xcc] ss:$16 sps:$4 sm:$0xff]  }
  0x42   :  { %292 = vmatpush1.bf16.msra.mxu0 %v1766_v6  ;;  %333 = vmatpush1.bf16.msra.mxu1 %v1790_v18  ;;  %v1806_v32 = vld [vmem:[#allocation5] ss:$12 sps:$4 sm:$0xff]   ;;  %v1811_v33 = vld [vmem:[#allocation5 + $0x1c] ss:$12 sps:$4 sm:$0xff]   ;;  %v1809_v36 = vld [vmem:[#allocation5 + $0x18] ss:$12 sps:$4 sm:$0xff]  }
  0x43   :  { %293 = vmatprep.subr.bf16.mxu0 %v1767_v7  ;;  %334 = vmatprep.subr.bf16.mxu1 %v1791_v19  ;;  %v1802_v34 = vld [vmem:[#allocation3 + $0xc8] ss:$16 sps:$4 sm:$0xff]   ;;  %v1803_v35 = vld [vmem:[#allocation3 + $0xec] ss:$16 sps:$4 sm:$0xff]   ;;  %v1814_v37 = vld [vmem:[#allocation5 + $0x34] ss:$12 sps:$4 sm:$0xff]  }
  0x44   :  { %v1805_v38 = vld [vmem:[#allocation3 + $0xe8] ss:$16 sps:$4 sm:$0xff]   ;;  %v1812_v39 = vld [vmem:[#allocation5 + $0x30] ss:$12 sps:$4 sm:$0xff]   ;;  %v1838_v44 = vld [vmem:[#allocation5 + $0xe0] ss:$12 sps:$4 sm:$0xff]  }
  0x45   :  { %v1833_v40 = vld [vmem:[#allocation5 + $0xc8] ss:$12 sps:$4 sm:$0xff]   ;;  %v1817_v41 = vld [vmem:[#allocation5 + $0x4c] ss:$12 sps:$4 sm:$0xff]   ;;  %v1820_v45 = vld [vmem:[#allocation5 + $0x64] ss:$12 sps:$4 sm:$0xff]  }
  0x46   :  { %294 = vmatpush1.bf16.msra.mxu0 %v1769_v8  ;;  %335 = vmatpush1.bf16.msra.mxu1 %v1793_v22  ;;  %v1834_v42 = vld [vmem:[#allocation5 + $0x8] ss:$12 sps:$4 sm:$0xff]   ;;  %v1818_v46 = vld [vmem:[#allocation5 + $0x60] ss:$12 sps:$4 sm:$0xff]   ;;  %v1843_v48 = vld [vmem:[#allocation5 + $0xf8] ss:$12 sps:$4 sm:$0xff]  }
  0x47   :  { %295 = vmatprep.subr.bf16.mxu0 %v1770_v9  ;;  %336 = vmatprep.subr.bf16.mxu1 %v1794_v23  ;;  %v1815_v43 = vld [vmem:[#allocation5 + $0x48] ss:$12 sps:$4 sm:$0xff]   ;;  %v1839_v47 = vld [vmem:[#allocation5 + $0x20] ss:$12 sps:$4 sm:$0xff]   ;;  %v1821_v50 = vld [vmem:[#allocation5 + $0x78] ss:$12 sps:$4 sm:$0xff]  }
  0x48   :  { %v1823_v49 = vld [vmem:[#allocation5 + $0x7c] ss:$12 sps:$4 sm:$0xff]   ;;  %v1844_v51 = vld [vmem:[#allocation5 + $0x38] ss:$12 sps:$4 sm:$0xff]   ;;  %v1826_v53 = vld [vmem:[#allocation5 + $0x94] ss:$12 sps:$4 sm:$0xff]  }
  0x49   :  { %v1848_v52 = vld [vmem:[#allocation5 + $0x110] ss:$12 sps:$4 sm:$0xff]   ;;  %v1853_v56 = vld [vmem:[#allocation5 + $0x128] ss:$12 sps:$4 sm:$0xff]   ;;  %v1829_v57 = vld [vmem:[#allocation5 + $0xac] ss:$12 sps:$4 sm:$0xff]  }
  0x4a   :  { %296 = vmatpush1.bf16.msra.mxu0 %v1772_v13  ;;  %337 = vmatpush1.bf16.msra.mxu1 %v1796_v26  ;;  %v1849_v54 = vld [vmem:[#allocation5 + $0x50] ss:$12 sps:$4 sm:$0xff]   ;;  %v1854_v58 = vld [vmem:[#allocation5 + $0x68] ss:$12 sps:$4 sm:$0xff]   ;;  %v1858_v60 = vld [vmem:[#allocation5 + $0x140] ss:$12 sps:$4 sm:$0xff]  }
  0x4b   :  { %297 = vmatprep.subr.bf16.mxu0 %v1773_v16  ;;  %338 = vmatprep.subr.bf16.mxu1 %v1797_v27  ;;  %v1824_v55 = vld [vmem:[#allocation5 + $0x90] ss:$12 sps:$4 sm:$0xff]   ;;  %v1827_v59 = vld [vmem:[#allocation5 + $0xa8] ss:$12 sps:$4 sm:$0xff]   ;;  %v1859_v62 = vld [vmem:[#allocation5 + $0x80] ss:$12 sps:$4 sm:$0xff]  }
  0x4c   :  { %v1832_v61 = vld [vmem:[#allocation5 + $0xc4] ss:$12 sps:$4 sm:$0xff]   ;;  %v1830_v63 = vld [vmem:[#allocation5 + $0xc0] ss:$12 sps:$4 sm:$0xff]   ;;  %v1837_v0 = vld [vmem:[#allocation5 + $0xdc] ss:$12 sps:$4 sm:$0xff]  }
  0x4d   :  { %v1835_v1 = vld [vmem:[#allocation5 + $0xd8] ss:$12 sps:$4 sm:$0xff]   ;;  %v1842_v2 = vld [vmem:[#allocation5 + $0xf4] ss:$12 sps:$4 sm:$0xff]   ;;  %v1840_v3 = vld [vmem:[#allocation5 + $0xf0] ss:$12 sps:$4 sm:$0xff]  }
  0x4e   :  { %298 = vmatpush1.bf16.msra.mxu0 %v1775_v17  ;;  %339 = vmatpush1.bf16.msra.mxu1 %v1799_v30  ;;  %v1847_v4 = vld [vmem:[#allocation5 + $0x10c] ss:$12 sps:$4 sm:$0xff]   ;;  %v1845_v5 = vld [vmem:[#allocation5 + $0x108] ss:$12 sps:$4 sm:$0xff]   ;;  %v1852_v6 = vld [vmem:[#allocation5 + $0x124] ss:$12 sps:$4 sm:$0xff]  }
  0x4f   :  { %299 = vmatprep.subr.bf16.mxu0 %v1776_v20  ;;  %340 = vmatprep.subr.bf16.mxu1 %v1800_v31  ;;  %v1850_v7 = vld [vmem:[#allocation5 + $0x120] ss:$12 sps:$4 sm:$0xff]   ;;  %v1857_v8 = vld [vmem:[#allocation5 + $0x13c] ss:$12 sps:$4 sm:$0xff]   ;;  %v1855_v9 = vld [vmem:[#allocation5 + $0x138] ss:$12 sps:$4 sm:$0xff]   ;;  %v107_v20 = vlaneseq }
  0x50   :  { %v1862_v10 = vld [vmem:[#allocation5 + $0x154] ss:$12 sps:$4 sm:$0xff]   ;;  %v1863_v11 = vld [vmem:[#allocation5 + $0x158] ss:$12 sps:$4 sm:$0xff]   ;;  %v1860_v12 = vld [vmem:[#allocation5 + $0x150] ss:$12 sps:$4 sm:$0xff]  }
  0x51   :  { %v1864_v13 = vld [vmem:[#allocation5 + $0x98] ss:$12 sps:$4 sm:$0xff]   ;;  %v1868_v15 = vld [vmem:[#allocation5 + $0x170] ss:$12 sps:$4 sm:$0xff]   ;;  %v1865_v16 = vld [vmem:[#allocation5 + $0x168] ss:$12 sps:$4 sm:$0xff]  }
  0x52   :  { %300 = vmatpush1.bf16.msra.mxu0 %v1778_v21  ;;  %341 = vmatpush1.bf16.msra.mxu1 %v1802_v34  ;;  %v1867_v14 = vld [vmem:[#allocation5 + $0x16c] ss:$12 sps:$4 sm:$0xff]   ;;  %v1869_v17 = vld [vmem:[#allocation5 + $0xb0] ss:$12 sps:$4 sm:$0xff]   ;;  %v1873_v19 = vld [vmem:[#allocation5 + $0x248] ss:$12 sps:$4 sm:$0xff]  }
  0x53   :  { %301 = vmatprep.subr.bf16.mxu0 %v1779_v24  ;;  %342 = vmatprep.subr.bf16.mxu1 %v1803_v35  ;;  %v1872_v18 = vld [vmem:[#allocation5 + $0x184] ss:$12 sps:$4 sm:$0xff]   ;;  %v2126_v21 = vshrl.u32 %v107_v20, 7  ;;  %v2132_v23 = vld [vmem:[%s2168_s3] sm:$0xf] }
  0x54   :  { %v1913_v20 = vld [vmem:[#allocation5 + $0x258] ss:$12 sps:$4 sm:$0xff]  }
  0x55   :  { %v109_v22 = vsub.s32 0, %v2126_v21  ;;  %v113_v24 = vsub.s32 1, %v2126_v21  ;;  %v121_v35 = vsub.s32 3, %v2126_v21 }
  0x56   :  { %302 = vmatpush1.bf16.msra.mxu0 %v1781_v25  ;;  %343 = vmatpush1.bf16.msra.mxu1 %v1805_v38  ;;  %v1874_v38 = vld [vmem:[#allocation5 + $0x188] ss:$12 sps:$4 sm:$0xff]  }
  0x57   :  { %1034 = vmatprep.subr.bf16.mxu0 %v1808_v28  ;;  %1645 = vmatprep.subr.bf16.mxu1 %v1833_v40  ;;  %v110_v25 = vrot.slane %v2132_v23, %v109_v22  ;;  %v114_v26 = vrot.slane %v2132_v23, %v113_v24  ;;  %v1877_v40 = vld [vmem:[#allocation5 + $0x19c] ss:$12 sps:$4 sm:$0xff]  }
  0x59   :  { %320 = vmatmul.mubr.bf16.vlgmr.msra.gmra.mrb[0].mxu0 %v72_v29  ;;  %361 = vmatmul.mubr.bf16.vlgmr.msra.gmra.mrb[0].mxu1 %v72_v29 }
  0x5a   :  { %1035 = vmatpush1.bf16.msra.mxu0 %v1806_v32  ;;  %1646 = vmatpush3.bf16.msra.mxu1 %v1834_v42  ;;  %v122_v42 = vrot.slane %v2132_v23, %v121_v35  ;;  %v1931_v35 = vld [vmem:[#allocation5 + $0x2e8] ss:$12 sps:$4 sm:$0xff]  }
  0x5b   :  { %1036 = vmatprep.subr.bf16.mxu0 %v1811_v33  ;;  %1647 = vmatprep.subr.bf16.mxu1 %v1838_v44  ;;  %v1879_v44 = vld [vmem:[#allocation5 + $0x1a0] ss:$12 sps:$4 sm:$0xff]  }
  0x5e   :  { %1037 = vmatpush1.bf16.msra.mxu0 %v1809_v36  ;;  %1648 = vmatpush3.bf16.msra.mxu1 %v1839_v47 }
  0x5f   :  { %1038 = vmatprep.subr.bf16.mxu0 %v1814_v37  ;;  %1649 = vmatprep.subr.bf16.mxu1 %v1843_v48  ;;  %v1870_v37 = vld [vmem:[#allocation5 + $0x180] ss:$12 sps:$4 sm:$0xff]  }
  0x62   :  { %1039 = vmatpush1.bf16.msra.mxu0 %v1812_v39  ;;  %1650 = vmatpush3.bf16.msra.mxu1 %v1844_v51  ;;  %v1880_v51 = vld [vmem:[#allocation5 + $0x1b0] ss:$12 sps:$4 sm:$0xff]  }
  0x63   :  { %1040 = vmatprep.subr.bf16.mxu0 %v1817_v41  ;;  %1651 = vmatprep.subr.bf16.mxu1 %v1848_v52  ;;  %v1878_v41 = vld [vmem:[#allocation5 + $0x260] ss:$12 sps:$4 sm:$0xff]   ;;  %v1884_v52 = vld [vmem:[#allocation5 + $0x1b8] ss:$12 sps:$4 sm:$0xff]  }
  0x66   :  { %1041 = vmatpush1.bf16.msra.mxu0 %v1815_v43  ;;  %1652 = vmatpush3.bf16.msra.mxu1 %v1849_v54  ;;  %v1875_v43 = vld [vmem:[#allocation5 + $0x198] ss:$12 sps:$4 sm:$0xff]  }
  0x67   :  { %1042 = vmatprep.subr.bf16.mxu0 %v1820_v45  ;;  %1653 = vmatprep.subr.bf16.mxu1 %v1853_v56  ;;  %v1882_v45 = vld [vmem:[#allocation5 + $0x1b4] ss:$12 sps:$4 sm:$0xff]   ;;  %v1887_v54 = vld [vmem:[#allocation5 + $0x1cc] ss:$12 sps:$4 sm:$0xff]  }
  0x6a   :  { %1043 = vmatpush1.bf16.msra.mxu0 %v1818_v46  ;;  %1654 = vmatpush3.bf16.msra.mxu1 %v1854_v58  ;;  %v1883_v46 = vld [vmem:[#allocation5 + $0x278] ss:$12 sps:$4 sm:$0xff]   ;;  %v1885_v58 = vld [vmem:[#allocation5 + $0x1c8] ss:$12 sps:$4 sm:$0xff]  }
  0x6b   :  { %1044 = vmatprep.subr.bf16.mxu0 %v1823_v49  ;;  %1655 = vmatprep.subr.bf16.mxu1 %v1858_v60  ;;  %v1892_v60 = vld [vmem:[#allocation5 + $0x1e4] ss:$12 sps:$4 sm:$0xff]  }
  0x6e   :  { %1045 = vmatpush1.bf16.msra.mxu0 %v1821_v50  ;;  %1656 = vmatpush3.bf16.msra.mxu1 %v1859_v62  ;;  %v117_v62 = vsub.s32 2, %v2126_v21  ;;  %v1952_v21 = vld [vmem:[#allocation7 + $0x90] sm:$0xff]  }
  0x6f   :  { %1046 = vmatprep.subr.bf16.mxu0 %v1826_v53  ;;  %1657 = vmatprep.subr.bf16.mxu1 %v1863_v11  ;;  %v1907_v11 = vld [vmem:[#allocation5 + $0x22c] ss:$12 sps:$4 sm:$0xff]  }
  0x72   :  { %1047 = vmatpush1.bf16.msra.mxu0 %v1824_v55  ;;  %1658 = vmatpush3.bf16.msra.mxu1 %v1864_v13  ;;  %v1888_v55 = vld [vmem:[#allocation5 + $0x290] ss:$12 sps:$4 sm:$0xff]  }
  0x73   :  { %1048 = vmatprep.subr.bf16.mxu0 %v1829_v57  ;;  %1659 = vmatprep.subr.bf16.mxu1 %v1868_v15  ;;  %v1909_v15 = vld [vmem:[#allocation5 + $0x230] ss:$12 sps:$4 sm:$0xff]  }
  0x76   :  { %1049 = vmatpush1.bf16.msra.mxu0 %v1827_v59  ;;  %1660 = vmatpush3.bf16.msra.mxu1 %v1869_v17  ;;  %v1889_v59 = vld [vmem:[#allocation5 + $0x1d0] ss:$12 sps:$4 sm:$0xff]  }
  0x77   :  { %1050 = vmatprep.subr.bf16.mxu0 %v1832_v61  ;;  %1667 = vmatprep.subr.bf16.mxu1 %v1873_v19  ;;  %v1893_v61 = vld [vmem:[#allocation5 + $0x2a8] ss:$12 sps:$4 sm:$0xff]  }
  0x78   :  { %v1915_v19 = vld [vmem:[#allocation5 + $0x25c] ss:$12 sps:$4 sm:$0xff]  }
  0x7a   :  { %1051 = vmatpush1.bf16.msra.mxu0 %v1830_v63  ;;  %v1890_v63 = vld [vmem:[#allocation5 + $0x1e0] ss:$12 sps:$4 sm:$0xff]  }
  0x7b   :  { %1052 = vmatprep.subr.bf16.mxu0 %v1837_v0  ;;  %v1894_v0 = vld [vmem:[#allocation5 + $0x1e8] ss:$12 sps:$4 sm:$0xff]  }
  0x7e   :  { %1053 = vmatpush1.bf16.msra.mxu0 %v1835_v1  ;;  %v1897_v1 = vld [vmem:[#allocation5 + $0x1fc] ss:$12 sps:$4 sm:$0xff]  }
  0x7f   :  { %1054 = vmatprep.subr.bf16.mxu0 %v1842_v2  ;;  %v1898_v2 = vld [vmem:[#allocation5 + $0x2c0] ss:$12 sps:$4 sm:$0xff]  }
  0x82   :  { %1055 = vmatpush1.bf16.msra.mxu0 %v1840_v3  ;;  %v118_v3 = vrot.slane %v2132_v23, %v117_v62  ;;  %v1918_v23 = vld [vmem:[#allocation5 + $0x274] ss:$12 sps:$4 sm:$0xff]  }
  0x83   :  { %1056 = vmatprep.subr.bf16.mxu0 %v1847_v4  ;;  %v1895_v4 = vld [vmem:[#allocation5 + $0x1f8] ss:$12 sps:$4 sm:$0xff]  }
  0x86   :  { %1057 = vmatpush1.bf16.msra.mxu0 %v1845_v5  ;;  %v1899_v5 = vld [vmem:[#allocation5 + $0x200] ss:$12 sps:$4 sm:$0xff]  }
  0x87   :  { %1058 = vmatprep.subr.bf16.mxu0 %v1852_v6  ;;  %v1902_v6 = vld [vmem:[#allocation5 + $0x214] ss:$12 sps:$4 sm:$0xff]  }
  0x8a   :  { %1059 = vmatpush1.bf16.msra.mxu0 %v1850_v7  ;;  %v1903_v7 = vld [vmem:[#allocation5 + $0x2d8] ss:$12 sps:$4 sm:$0xff]  }
  0x8b   :  { %1060 = vmatprep.subr.bf16.mxu0 %v1857_v8 }
  0x8e   :  { %1061 = vmatpush1.bf16.msra.mxu0 %v1855_v9  ;;  %v1900_v9 = vld [vmem:[#allocation5 + $0x210] ss:$12 sps:$4 sm:$0xff]  }
  0x8f   :  { %1062 = vmatprep.subr.bf16.mxu0 %v1862_v10  ;;  %v1904_v10 = vld [vmem:[#allocation5 + $0x218] ss:$12 sps:$4 sm:$0xff]  }
  0x92   :  { %1063 = vmatpush1.bf16.msra.mxu0 %v1860_v12  ;;  %v1908_v12 = vld [vmem:[#allocation5 + $0x2f0] ss:$12 sps:$4 sm:$0xff]  }
  0x93   :  { %1064 = vmatprep.subr.bf16.mxu0 %v1867_v14  ;;  %v1905_v14 = vld [vmem:[#allocation5 + $0x228] ss:$12 sps:$4 sm:$0xff]  }
  0x96   :  { %1065 = vmatpush1.bf16.msra.mxu0 %v1865_v16  ;;  %v1912_v16 = vld [vmem:[#allocation5 + $0x244] ss:$12 sps:$4 sm:$0xff]  }
  0x97   :  { %1075 = vmatprep.subr.bf16.mxu0 %v1872_v18  ;;  %v1910_v18 = vld [vmem:[#allocation5 + $0x240] ss:$12 sps:$4 sm:$0xff]  }
 0x12c   :  { %v321_v27 = vpop.f32.mrb[0].mxu0  ;;  %v362_v47 = vpop.f32.mrb[0].mxu1 }
 0x12d   :  { %v322_v28 = vadd.f32 %v321_v27, %v110_v25  ;;  %v323_v29 = vpop.f32.mrb[1].mxu0  ;;  %v364_v48 = vpop.f32.mrb[1].mxu1  ;;  %v363_v8 = vadd.f32 %v362_v47, %v118_v3  ;;  %v1916_v25 = vld [vmem:[#allocation5 + $0x270] ss:$12 sps:$4 sm:$0xff]   ;;  %v1919_v27 = vld [vmem:[#allocation5 + $0x288] ss:$12 sps:$4 sm:$0xff]  }
 0x12e   :  { %v324_v30 = vadd.f32 %v323_v29, %v114_v26  ;;  %v325_v31 = vpop.f32.mrb[2].mxu0  ;;  %v365_v49 = vadd.f32 %v364_v48, %v122_v42  ;;  %v366_v50 = vpop.f32.mrb[2].mxu1  ;;  %v1921_v26 = vld [vmem:[#allocation5 + $0x28c] ss:$12 sps:$4 sm:$0xff]   ;;  %v1946_v48 = vld [vmem:[#allocation7 + $0x70] sm:$0xff]  }
 0x12f   :  { %v369_v32 = vmax.f32 %v322_v28, 0.0  ;;  %v326_v33 = vpop.f32.mrb[3].mxu0  ;;  %v367_v53 = vpop.f32.mrb[3].mxu1  ;;  %v371_v13 = vmax.f32 %v363_v8, 0.0  ;;  %v1924_v28 = vld [vmem:[#allocation5 + $0x2a4] ss:$12 sps:$4 sm:$0xff]  }
 0x130   :  { %v370_v34 = vmax.f32 %v324_v30, 0.0  ;;  %v372_v56 = vmax.f32 %v365_v49, 0.0  ;;  %v1922_v29 = vld [vmem:[#allocation5 + $0x2a0] ss:$12 sps:$4 sm:$0xff]   ;;  %v1927_v30 = vld [vmem:[#allocation5 + $0x2bc] ss:$12 sps:$4 sm:$0xff]  }
 0x131   :  { %v373_v39 = vpack.c.bf16 %v369_v32, %v369_v32  ;;  %v375_v17 = vpack.c.bf16 %v371_v13, %v371_v13  ;;  %v1925_v31 = vld [vmem:[#allocation5 + $0x2b8] ss:$12 sps:$4 sm:$0xff]   ;;  %v1930_v32 = vld [vmem:[#allocation5 + $0x2d4] ss:$12 sps:$4 sm:$0xff]   ;;  %v1928_v33 = vld [vmem:[#allocation5 + $0x2d0] ss:$12 sps:$4 sm:$0xff]  }
 0x132   :  { %v374_v36 = vpack.c.bf16 %v370_v34, %v370_v34  ;;  %v376_v57 = vpack.c.bf16 %v372_v56, %v372_v56  ;;  %v1933_v34 = vld [vmem:[#allocation5 + $0x2ec] ss:$12 sps:$4 sm:$0xff]   ;;  %v1947_v49 = vld [vmem:[#allocation7 + $0x30] sm:$0xff]  }
 0x133   :  { %v1940_v42 = vld [vmem:[#allocation7 + $0x58] sm:$0xff]   ;;  %v1945_v47 = vld [vmem:[#allocation7 + $0x28] sm:$0xff]  }
 0x134   :  { %1066 = vmatprep.mubr.bf16.mxu0 %v374_v36  ;;  %1148 = vmatprep.mubr.bf16.mxu1 %v374_v36  ;;  %v1934_v36 = vld [vmem:[#allocation7 + $0x40] sm:$0xff]   ;;  %v1948_v50 = vld [vmem:[#allocation7 + $0x78] sm:$0xff]  }
 0x135   :  { %1067 = vmatmul.mubr.bf16.vlgmr.msra.gmra.mrb[4].mxu0 %v373_v39  ;;  %1149 = vmatmul.mubr.bf16.vlgmr.msra.gmra.mrb[4].mxu1 %v373_v39  ;;  %v1937_v39 = vld [vmem:[#allocation7 + $0x8] sm:$0xff]  }
 0x136   :  { %1076 = vmatpush1.bf16.msra.mxu0 %v1870_v37  ;;  %1668 = vmatpush3.bf16.msra.mxu1 %v1874_v38  ;;  %v1935_v37 = vld [vmem:[#allocation7] sm:$0xff]   ;;  %v1936_v38 = vld [vmem:[#allocation7 + $0x48] sm:$0xff]  }
 0x137   :  { %1077 = vmatprep.subr.bf16.mxu0 %v1877_v40  ;;  %1669 = vmatprep.subr.bf16.mxu1 %v1878_v41  ;;  %v1938_v40 = vld [vmem:[#allocation7 + $0x50] sm:$0xff]  }
 0x138   :  { %1188 = vmatprep.mubr.bf16.mxu1 %v376_v57  ;;  %1107 = vmatprep.mubr.bf16.mxu0 %v376_v57  ;;  %v1939_v41 = vld [vmem:[#allocation7 + $0x10] sm:$0xff]  }
 0x13a   :  { %1078 = vmatpush1.bf16.msra.mxu0 %v1875_v43  ;;  %1670 = vmatpush3.bf16.msra.mxu1 %v1879_v44  ;;  %v1941_v43 = vld [vmem:[#allocation7 + $0x18] sm:$0xff]   ;;  %v1942_v44 = vld [vmem:[#allocation7 + $0x60] sm:$0xff]  }
 0x13b   :  { %1079 = vmatprep.subr.bf16.mxu0 %v1882_v45  ;;  %1671 = vmatprep.subr.bf16.mxu1 %v1883_v46  ;;  %v1943_v45 = vld [vmem:[#allocation7 + $0x20] sm:$0xff]   ;;  %v1944_v46 = vld [vmem:[#allocation7 + $0x68] sm:$0xff]  }
 0x13e   :  { %1080 = vmatpush1.bf16.msra.mxu0 %v1880_v51  ;;  %1672 = vmatpush3.bf16.msra.mxu1 %v1884_v52  ;;  %v1949_v51 = vld [vmem:[#allocation7 + $0x38] sm:$0xff]   ;;  %v2040_v52 = vmov 0.0  }
 0x13f   :  { %1081 = vmatprep.subr.bf16.mxu0 %v1887_v54  ;;  %1673 = vmatprep.subr.bf16.mxu1 %v1888_v55 }
 0x142   :  { %1082 = vmatpush1.bf16.msra.mxu0 %v1885_v58  ;;  %1674 = vmatpush3.bf16.msra.mxu1 %v1889_v59  ;;  %v505_v58 = vld [vmem:[%s2170_s5] sm:$0x7] }
 0x143   :  { %1083 = vmatprep.subr.bf16.mxu0 %v1892_v60  ;;  %1675 = vmatprep.subr.bf16.mxu1 %v1893_v61  ;;  %v518_v59 = vrot.slane %v505_v58, %v117_v62 }
 0x146   :  { %1084 = vmatpush1.bf16.msra.mxu0 %v1890_v63  ;;  %1676 = vmatpush3.bf16.msra.mxu1 %v1894_v0 }
 0x147   :  { %1085 = vmatprep.subr.bf16.mxu0 %v1897_v1  ;;  %1677 = vmatprep.subr.bf16.mxu1 %v1898_v2 }
 0x14a   :  { %1086 = vmatpush1.bf16.msra.mxu0 %v1895_v4  ;;  %1678 = vmatpush3.bf16.msra.mxu1 %v1899_v5  ;;  %v510_v4 = vrot.slane %v505_v58, %v109_v22  ;;  %v514_v5 = vrot.slane %v505_v58, %v113_v24  ;;  %v1953_v22 = vld [vmem:[#allocation7 + $0x98] sm:$0xff]   ;;  %v1954_v24 = vld [vmem:[#allocation7 + $0xa0] sm:$0xff]  }
 0x14b   :  { %1087 = vmatprep.subr.bf16.mxu0 %v1902_v6  ;;  %1679 = vmatprep.subr.bf16.mxu1 %v1903_v7 }
 0x14e   :  { %1088 = vmatpush1.bf16.msra.mxu0 %v1900_v9  ;;  %1680 = vmatpush3.bf16.msra.mxu1 %v1904_v10 }
 0x14f   :  { %1089 = vmatprep.subr.bf16.mxu0 %v1907_v11  ;;  %1681 = vmatprep.subr.bf16.mxu1 %v1908_v12 }
 0x152   :  { %1090 = vmatpush1.bf16.msra.mxu0 %v1905_v14  ;;  %1682 = vmatpush3.bf16.msra.mxu1 %v1909_v15  ;;  %v1950_v14 = vld [vmem:[#allocation7 + $0x80] sm:$0xff]  }
 0x153   :  { %1091 = vmatprep.subr.bf16.mxu0 %v1912_v16  ;;  %1689 = vmatprep.subr.bf16.mxu1 %v1934_v36  ;;  %v1951_v16 = vld [vmem:[#allocation7 + $0x88] sm:$0xff]  }
 0x155   :  { %1189 = vmatmul.mubr.bf16.vlgmr.msra.gmra.mrb[8].mxu1 %v375_v17 }
 0x156   :  { %1092 = vmatpush1.bf16.msra.mxu0 %v1910_v18  ;;  %1690 = vmatpush3.bf16.msra.mxu1 %v1935_v37  ;;  %v1956_v18 = vld [vmem:[#allocation7 + $0xb0] sm:$0xff]   ;;  %v1483_v37 = vstv %s2165_s0 }
 0x157   :  { %1093 = vmatprep.subr.bf16.mxu0 %v1915_v19  ;;  %1691 = vmatprep.subr.bf16.mxu1 %v1936_v38  ;;  %v1957_v19 = vld [vmem:[#allocation7 + $0xb8] sm:$0xff]  }
 0x15a   :  { %1094 = vmatpush1.bf16.msra.mxu0 %v1913_v20  ;;  %1692 = vmatpush3.bf16.msra.mxu1 %v1937_v39 }
 0x15b   :  { %1095 = vmatprep.subr.bf16.mxu0 %v1918_v23  ;;  %1693 = vmatprep.subr.bf16.mxu1 %v1938_v40 }
 0x15e   :  { %1096 = vmatpush1.bf16.msra.mxu0 %v1916_v25  ;;  %1694 = vmatpush3.bf16.msra.mxu1 %v1939_v41 }
 0x15f   :  { %1097 = vmatprep.subr.bf16.mxu0 %v1921_v26  ;;  %1695 = vmatprep.subr.bf16.mxu1 %v1940_v42 }
 0x162   :  { %1098 = vmatpush1.bf16.msra.mxu0 %v1919_v27  ;;  %1696 = vmatpush3.bf16.msra.mxu1 %v1941_v43 }
 0x163   :  { %1099 = vmatprep.subr.bf16.mxu0 %v1924_v28  ;;  %1697 = vmatprep.subr.bf16.mxu1 %v1942_v44 }
 0x166   :  { %1100 = vmatpush1.bf16.msra.mxu0 %v1922_v29  ;;  %1698 = vmatpush3.bf16.msra.mxu1 %v1943_v45 }
 0x167   :  { %1101 = vmatprep.subr.bf16.mxu0 %v1927_v30  ;;  %1699 = vmatprep.subr.bf16.mxu1 %v1944_v46  ;;  %v1620_v30 = vld [vmem:[%s2172_s7] ss:$0 sm:$0xff] }
 0x16a   :  { %1102 = vmatpush1.bf16.msra.mxu0 %v1925_v31  ;;  %1700 = vmatpush3.bf16.msra.mxu1 %v1945_v47 }
 0x16b   :  { %1103 = vmatprep.subr.bf16.mxu0 %v1930_v32  ;;  %1701 = vmatprep.subr.bf16.mxu1 %v1946_v48 }
 0x16e   :  { %1104 = vmatpush1.bf16.msra.mxu0 %v1928_v33  ;;  %1702 = vmatpush3.bf16.msra.mxu1 %v1947_v49 }
 0x16f   :  { %1105 = vmatprep.subr.bf16.mxu0 %v1933_v34  ;;  %1703 = vmatprep.subr.bf16.mxu1 %v1948_v50 }
 0x172   :  { %1106 = vmatpush1.bf16.msra.mxu0 %v1931_v35  ;;  %1704 = vmatpush3.bf16.msra.mxu1 %v1949_v51 }
 0x173   :  { %1720 = vmatprep.subr.bf16.mxu1 %v2040_v52 }
 0x175   :  { %1108 = vmatmul.mubr.bf16.vlgmr.msra.gmra.mrb[4].mxu0 %v375_v17  ;;  %v1955_v17 = vld [vmem:[#allocation7 + $0xa8] sm:$0xff]  }
 0x208   :  { %v1661_v53 = vpop.f32.mrb[4].mxu1 }
 0x209   :  { %v1662_v54 = vpop.f32.mrb[5].mxu1 }
 0x20a   :  { %v1663_v55 = vadd.f32 %v1662_v54, %v1661_v53  ;;  %v1664_v56 = vpop.f32.mrb[6].mxu1 }
 0x20b   :  { %v1665_v57 = vpop.f32.mrb[7].mxu1 }
 0x20c   :  { %v1151_v63 = vadd.f32 %v1663_v55, %v518_v59 }
 0x228   :  { %v1683_v60 = vpop.f32.mrb[8].mxu1 }
 0x229   :  { %v1684_v61 = vpop.f32.mrb[9].mxu1 }
 0x22a   :  { %v1685_v0 = vadd.f32 %v1684_v61, %v1683_v60  ;;  %v1686_v1 = vpop.f32.mrb[10].mxu1 }
 0x22b   :  { %v1687_v2 = vpop.f32.mrb[11].mxu1 }
 0x22c   :  { %v1191_v3 = vadd.f32 %v1685_v0, %v1151_v63 }
 0x22e   :  { %v1198_v20 = vmax.f32 %v1191_v3, 0.0 }
 0x230   :  { %v1201_v23 = vpack.c.bf16 %v1198_v20, %v1198_v20 }
 0x248   :  { %v1109_v6 = vpop.f32.mrb[4].mxu0 }
 0x249   :  { %v1740_v7 = vadd.f32 %v1109_v6, %v510_v4  ;;  %v1111_v8 = vpop.f32.mrb[5].mxu0 }
 0x24a   :  { %v1741_v9 = vadd.f32 %v1111_v8, %v514_v5  ;;  %v1113_v10 = vpop.f32.mrb[6].mxu0 }
 0x24b   :  { %v1196_v11 = vmax.f32 %v1740_v7, 0.0  ;;  %v1114_v62 = vpop.f32.mrb[7].mxu0 }
 0x24c   :  { %v1197_v12 = vmax.f32 %v1741_v9, 0.0 }
 0x24d   :  { %v1199_v15 = vpack.c.bf16 %v1196_v11, %v1196_v11 }
 0x24e   :  { %v1200_v13 = vpack.c.bf16 %v1197_v12, %v1197_v12 }
 0x250   :  { %1433 = vmatprep.mubr.bf16.mxu1 %v1200_v13 }
 0x251   :  { %1434 = vmatmul.mubr.bf16.vlgmr.msra.gmra.mrb[12].mxu1 %v1199_v15 }
 0x252   :  { %1721 = vmatpush3.bf16.msra.mxu1 %v1950_v14  ;;  %1736 = vmatprep.mubr.msk.bf16.mxu1 %vm2041_vm0, %v2040_v52 }
 0x253   :  { %1722 = vmatprep.subr.bf16.mxu1 %v2040_v52 }
 0x256   :  { %1723 = vmatpush3.bf16.msra.mxu1 %v1951_v16 }
 0x257   :  { %1724 = vmatprep.subr.bf16.mxu1 %v2040_v52 }
 0x25a   :  { %1725 = vmatpush3.bf16.msra.mxu1 %v1952_v21 }
 0x25b   :  { %1726 = vmatprep.subr.bf16.mxu1 %v2040_v52 }
 0x25e   :  { %1727 = vmatpush3.bf16.msra.mxu1 %v1953_v22 }
 0x25f   :  { %1728 = vmatprep.subr.bf16.mxu1 %v2040_v52 }
 0x262   :  { %1729 = vmatpush3.bf16.msra.mxu1 %v1954_v24 }
 0x263   :  { %1730 = vmatprep.subr.bf16.mxu1 %v2040_v52 }
 0x266   :  { %1731 = vmatpush3.bf16.msra.mxu1 %v1955_v17 }
 0x267   :  { %1732 = vmatprep.subr.bf16.mxu1 %v2040_v52 }
 0x26a   :  { %1733 = vmatpush3.bf16.msra.mxu1 %v1956_v18 }
 0x26b   :  { %1734 = vmatprep.subr.bf16.mxu1 %v2040_v52 }
 0x26e   :  { %1735 = vmatpush3.bf16.msra.mxu1 %v1957_v19 }
 0x271   :  { %1737 = vmatmul.mubr.bf16.vlgmr.msra.gmra.mrb[16].mxu1 %v1201_v23 }
 0x324   :  { %v1705_v25 = vpop.f32.mrb[12].mxu1 }
 0x325   :  { %v1706_v26 = vpop.f32.mrb[13].mxu1 }
 0x326   :  { %v1707_v27 = vadd.f32 %v1706_v26, %v1705_v25  ;;  %v1708_v28 = vpop.f32.mrb[14].mxu1 }
 0x327   :  { %v1709_v29 = vpop.f32.mrb[15].mxu1 }
 0x328   :  { %v1436_v31 = vadd.f32 %v1707_v27, %v1620_v30 }
 0x344   :  { %v1475_v32 = vpop.f32.mrb[16].mxu1 }
 0x345   :  { %v1476_v33 = vadd.f32 %v1475_v32, %v1436_v31  ;;  %v1738_v34 = vpop.f32.mrb[17].mxu1 }
 0x346   :  { %v1478_v35 = vpop.f32.mrb[18].mxu1 }
 0x347   :  { %1958 = vtanh.f32 %v1476_v33  ;;  %v1739_v36 = vpop.f32.mrb[19].mxu1 }
 0x351   :  { %v1959_v38 = vpop.eup %1958 }
 0x352   :  { %v1484_v39 = vmul.f32 %v1959_v38, %v1483_v37 }
 0x354   :  { %1485 = vst [vmem:[%s2173_s8] sm:$0xff] %v1484_v39 }
 0x355   :  { %1490 = vsyncpa [#allocation4], 1 }
 0x356   :  { %1491 = vsyncpa [#allocation6], 1 }

</bundles_post_ra>
